<compile_context>
chip_gen: v7x
topology: tpu7x:2x2x1
jax: 0.10.0
libtpu: 0.0.40
codegen_flags: <defaults>
</compile_context>

<pallas_src>
from functools import partial

import jax
import jax.numpy as jnp
from jax.experimental import pallas as pl
from jax.experimental.pallas import tpu as pltpu


def _rmsnorm_kernel(x_ref, g_ref, o_ref, *, eps, channels, unroll):
    """x_ref/o_ref: (1, C, TR, 128) VMEM blocks.  g_ref: (C,) f32 in SMEM (= g*sqrt(C))."""
    tr, lanes = x_ref.shape[2], x_ref.shape[3]

    # Pass 1: sum of squares over channels, one (TR, 128) f32 slice at a time,
    # so the full-block f32 upcast is never live (avoids vreg spills).
    def ss_body(c, acc):
        xc = x_ref[0, c].astype(jnp.float32)              # (TR, 128)
        return acc + xc * xc

    ss = jax.lax.fori_loop(0, channels, ss_body,
                           jnp.zeros((tr, lanes), jnp.float32), unroll=unroll)

    # 1 / max(||x||_2, eps) == rsqrt(max(ss, eps^2))  (sqrt is monotone): one EUP op.
    inv = jax.lax.rsqrt(jnp.maximum(ss, eps * eps))        # (TR, 128) f32

    # Pass 2: re-read each channel slice, scale, store lane-dense.
    def out_body(c, carry):
        xc = x_ref[0, c].astype(jnp.float32)
        o_ref[0, c] = (xc * (inv * g_ref[c])).astype(o_ref.dtype)
        return carry

    jax.lax.fori_loop(0, channels, out_body, 0, unroll=unroll)


def _block_cap_bytes():
    # ~4 MiB/block is safe on every generation (v7x has only 64 MiB VMEM);
    # on 128-MiB-VMEM chips (v5e/v6e) use 8 MiB to shave per-step overhead.
    try:
        if pltpu.get_tpu_info().vmem_capacity_bytes >= 96 * 1024 * 1024:
            return 8 * 1024 * 1024
    except Exception:
        pass
    return 4 * 1024 * 1024


def rms_norm(x, g, *, eps=1e-12, block_cap_bytes=None):
    """Pallas RMSNorm(dim=C): x (B, C, H, W), g broadcastable to (1, C, 1, 1)."""
    B, C, H, W = x.shape
    S = H * W
    L = 128
    itemsize = jnp.dtype(x.dtype).itemsize
    pack = {4: 8, 2: 16, 1: 32}.get(itemsize, 8)           # sublane packing factor
    if block_cap_bytes is None:
        block_cap_bytes = _block_cap_bytes()

    # ---- lane-dense spatial layout: flatten H*W, pad up to 128-lane rows ----
    r_min = -(-S // L)                                       # rows needed for the data
    if C * r_min * L * itemsize <= block_cap_bytes:
        # Whole (per-batch) slab fits in one capped block: single full-extent row tile.
        R, TR = r_min, r_min
    else:
        # Tile the rows: pad row count to the packing factor so tiles divide exactly.
        R = -(-r_min // pack) * pack
        max_tr = max(pack, (block_cap_bytes // (C * L * itemsize)) // pack * pack)
        cands = [t for t in range(pack, min(R, max_tr) + 1, pack) if R % t == 0]
        best = max(cands)
        TR = best
        # Prefer an even total grid (v7x megacore balance), but never shrink below best/2.
        for t in sorted(cands, reverse=True):
            if (B * (R // t)) % 2 == 0 and 2 * t >= best:
                TR = t
                break

    P = R * L
    x2 = x.reshape(B, C, S)
    if P != S:
        x2 = jnp.pad(x2, ((0, 0), (0, 0), (0, P - S)))       # zero pad: safe (output 0)
    x4 = x2.reshape(B, C, R, L)

    # g stays float32; fold sqrt(C) into it; ship as a tiny (C,) SMEM vector.
    g_vec = jnp.asarray(g, jnp.float32).reshape(-1) * (float(C) ** 0.5)
    assert g_vec.shape == (C,), g_vec.shape

    # Explicit VMEM budget: 2 bufs each for the in & out blocks + f32 scratch.
    block_bytes = C * TR * L * itemsize
    scratch_bytes = 8 * TR * L * 4
    needed = 4 * block_bytes + scratch_bytes + (2 << 20)
    vmem_limit = int(min(max(needed, 32 << 20), 64 << 20))

    kernel = partial(_rmsnorm_kernel, eps=float(eps), channels=C,
                     unroll=min(C, 8))

    out4 = pl.pallas_call(
        kernel,
        out_shape=jax.ShapeDtypeStruct((B, C, R, L), x.dtype),
        grid=(B, R // TR),
        in_specs=[
            pl.BlockSpec((1, C, TR, L), lambda b, r: (b, 0, r, 0)),
            pl.BlockSpec(memory_space=pltpu.MemorySpace.SMEM),
        ],
        out_specs=pl.BlockSpec((1, C, TR, L), lambda b, r: (b, 0, r, 0)),
        compiler_params=pltpu.CompilerParams(
            dimension_semantics=("parallel", "parallel"),
            vmem_limit_bytes=vmem_limit,
        ),
    )(x4, g_vec)

    out2 = out4.reshape(B, C, P)
    if P != S:
        out2 = out2[:, :, :S]
    return out2.reshape(B, C, H, W)


def _reference(x, g, eps=1e-12):
    """Pure-JAX reference mirroring the PyTorch forward exactly."""
    C = x.shape[1]
    norm = jnp.sqrt(jnp.sum(x.astype(jnp.float32) ** 2, axis=1, keepdims=True))
    out = x.astype(jnp.float32) / jnp.maximum(norm, eps) * g * (C ** 0.5)
    return out.astype(x.dtype)


if __name__ == "__main__":
    key = jax.random.PRNGKey(0)
    kx, kg = jax.random.split(key)

    B, C, H, W = 2, 4, 16, 16
    x = jax.random.normal(kx, (B, C, H, W), dtype=jnp.float32)
    # Parameter is ones-initialized in the module; perturb it to exercise the
    # per-channel scaling path.
    g = 1.0 + 0.1 * jax.random.normal(kg, (1, C, 1, 1), dtype=jnp.float32)

    out = jax.block_until_ready(rms_norm(x, g))
    ref = jax.block_until_ready(_reference(x, g))

    assert out.shape == (B, C, H, W), out.shape
    assert out.dtype == x.dtype, out.dtype
    max_err = jnp.max(jnp.abs(out - ref))
    assert jnp.allclose(out, ref, atol=1e-5, rtol=1e-5), f"max abs err {max_err}"
    print("KERNEL_OK")
</pallas_src>

<mosaic_0001>
module attributes {stable_mosaic.version = 11 : i64} {
  func.func @_rmsnorm_kernel(%arg0: i32, %arg1: i32, %arg2: memref<1x4x2x128xf32, #tpu.memory_space<vmem>>, %arg3: memref<4xf32, #tpu.memory_space<smem>>, %arg4: memref<1x4x2x128xf32, #tpu.memory_space<vmem>>) attributes {dimension_semantics = [#tpu.dimension_semantics<parallel>, #tpu.dimension_semantics<parallel>], iteration_bounds = array<i64: 2, 1>, scalar_prefetch = 0 : i64, scratch_operands = 0 : i64, tpu.core_type = #tpu.core_type<tc>, window_params = [{transform_indices = @transform_0, window_bounds = array<i64: 1, 4, 2, 128>}, {transform_indices = @transform_1, window_bounds = array<i64: 4>}, {transform_indices = @transform_2, window_bounds = array<i64: 1, 4, 2, 128>}]} {
    %cst = arith.constant 0.000000e+00 : f32
    %0 = vector.broadcast %cst : f32 to vector<2x128xf32>
    %c0_i32 = arith.constant 0 : i32
    %c0 = arith.constant 0 : index
    %1 = arith.index_cast %c0_i32 : i32 to index
    %c0_0 = arith.constant 0 : index
    %c0_1 = arith.constant 0 : index
    %2 = vector.load %arg2[%c0, %1, %c0_0, %c0_1] : memref<1x4x2x128xf32, #tpu.memory_space<vmem>>, vector<1x1x2x128xf32>
    %3 = vector.shape_cast %2 : vector<1x1x2x128xf32> to vector<2x128xf32>
    %4 = arith.mulf %3, %3 : vector<2x128xf32>
    %5 = arith.addf %0, %4 : vector<2x128xf32>
    %c1_i32 = arith.constant 1 : i32
    %c0_2 = arith.constant 0 : index
    %6 = arith.index_cast %c1_i32 : i32 to index
    %c0_3 = arith.constant 0 : index
    %c0_4 = arith.constant 0 : index
    %7 = vector.load %arg2[%c0_2, %6, %c0_3, %c0_4] : memref<1x4x2x128xf32, #tpu.memory_space<vmem>>, vector<1x1x2x128xf32>
    %8 = vector.shape_cast %7 : vector<1x1x2x128xf32> to vector<2x128xf32>
    %9 = arith.mulf %8, %8 : vector<2x128xf32>
    %10 = arith.addf %5, %9 : vector<2x128xf32>
    %c2_i32 = arith.constant 2 : i32
    %c0_5 = arith.constant 0 : index
    %11 = arith.index_cast %c2_i32 : i32 to index
    %c0_6 = arith.constant 0 : index
    %c0_7 = arith.constant 0 : index
    %12 = vector.load %arg2[%c0_5, %11, %c0_6, %c0_7] : memref<1x4x2x128xf32, #tpu.memory_space<vmem>>, vector<1x1x2x128xf32>
    %13 = vector.shape_cast %12 : vector<1x1x2x128xf32> to vector<2x128xf32>
    %14 = arith.mulf %13, %13 : vector<2x128xf32>
    %15 = arith.addf %10, %14 : vector<2x128xf32>
    %c3_i32 = arith.constant 3 : i32
    %c0_8 = arith.constant 0 : index
    %16 = arith.index_cast %c3_i32 : i32 to index
    %c0_9 = arith.constant 0 : index
    %c0_10 = arith.constant 0 : index
    %17 = vector.load %arg2[%c0_8, %16, %c0_9, %c0_10] : memref<1x4x2x128xf32, #tpu.memory_space<vmem>>, vector<1x1x2x128xf32>
    %18 = vector.shape_cast %17 : vector<1x1x2x128xf32> to vector<2x128xf32>
    %19 = arith.mulf %18, %18 : vector<2x128xf32>
    %20 = arith.addf %15, %19 : vector<2x128xf32>
    %c4_i32 = arith.constant 4 : i32
    %cst_11 = arith.constant 1.000000e-24 : f32
    %21 = vector.broadcast %cst_11 : f32 to vector<2x128xf32>
    %22 = arith.maximumf %20, %21 : vector<2x128xf32>
    %23 = math.rsqrt %22 : vector<2x128xf32>
    %c0_i32_12 = arith.constant 0 : i32
    %c0_13 = arith.constant 0 : index
    %24 = arith.index_cast %c0_i32_12 : i32 to index
    %c0_14 = arith.constant 0 : index
    %c0_15 = arith.constant 0 : index
    %25 = vector.load %arg2[%c0_13, %24, %c0_14, %c0_15] : memref<1x4x2x128xf32, #tpu.memory_space<vmem>>, vector<1x1x2x128xf32>
    %26 = vector.shape_cast %25 : vector<1x1x2x128xf32> to vector<2x128xf32>
    %27 = arith.index_cast %c0_i32_12 : i32 to index
    %28 = memref.load %arg3[%27] : memref<4xf32, #tpu.memory_space<smem>>
    %29 = vector.broadcast %28 : f32 to vector<2x128xf32>
    %30 = arith.mulf %23, %29 : vector<2x128xf32>
    %31 = arith.mulf %26, %30 : vector<2x128xf32>
    %c0_16 = arith.constant 0 : index
    %32 = arith.index_cast %c0_i32_12 : i32 to index
    %c0_17 = arith.constant 0 : index
    %c0_18 = arith.constant 0 : index
    %33 = vector.load %arg4[%c0_16, %32, %c0_17, %c0_18] : memref<1x4x2x128xf32, #tpu.memory_space<vmem>>, vector<1x1x2x128xf32>
    %34 = vector.shape_cast %33 : vector<1x1x2x128xf32> to vector<2x128xf32>
    %35 = vector.shape_cast %31 : vector<2x128xf32> to vector<1x1x2x128xf32>
    tpu.vector_store %arg4[%c0_16, %32, %c0_17, %c0_18], %35 {strides = array<i32>} : memref<1x4x2x128xf32, #tpu.memory_space<vmem>>, vector<1x1x2x128xf32>,
    %c1_i32_19 = arith.constant 1 : i32
    %c0_20 = arith.constant 0 : index
    %36 = arith.index_cast %c1_i32_19 : i32 to index
    %c0_21 = arith.constant 0 : index
    %c0_22 = arith.constant 0 : index
    %37 = vector.load %arg2[%c0_20, %36, %c0_21, %c0_22] : memref<1x4x2x128xf32, #tpu.memory_space<vmem>>, vector<1x1x2x128xf32>
    %38 = vector.shape_cast %37 : vector<1x1x2x128xf32> to vector<2x128xf32>
    %39 = arith.index_cast %c1_i32_19 : i32 to index
    %40 = memref.load %arg3[%39] : memref<4xf32, #tpu.memory_space<smem>>
    %41 = vector.broadcast %40 : f32 to vector<2x128xf32>
    %42 = arith.mulf %23, %41 : vector<2x128xf32>
    %43 = arith.mulf %38, %42 : vector<2x128xf32>
    %c0_23 = arith.constant 0 : index
    %44 = arith.index_cast %c1_i32_19 : i32 to index
    %c0_24 = arith.constant 0 : index
    %c0_25 = arith.constant 0 : index
    %45 = vector.load %arg4[%c0_23, %44, %c0_24, %c0_25] : memref<1x4x2x128xf32, #tpu.memory_space<vmem>>, vector<1x1x2x128xf32>
    %46 = vector.shape_cast %45 : vector<1x1x2x128xf32> to vector<2x128xf32>
    %47 = vector.shape_cast %43 : vector<2x128xf32> to vector<1x1x2x128xf32>
    tpu.vector_store %arg4[%c0_23, %44, %c0_24, %c0_25], %47 {strides = array<i32>} : memref<1x4x2x128xf32, #tpu.memory_space<vmem>>, vector<1x1x2x128xf32>,
    %c2_i32_26 = arith.constant 2 : i32
    %c0_27 = arith.constant 0 : index
    %48 = arith.index_cast %c2_i32_26 : i32 to index
    %c0_28 = arith.constant 0 : index
    %c0_29 = arith.constant 0 : index
    %49 = vector.load %arg2[%c0_27, %48, %c0_28, %c0_29] : memref<1x4x2x128xf32, #tpu.memory_space<vmem>>, vector<1x1x2x128xf32>
    %50 = vector.shape_cast %49 : vector<1x1x2x128xf32> to vector<2x128xf32>
    %51 = arith.index_cast %c2_i32_26 : i32 to index
    %52 = memref.load %arg3[%51] : memref<4xf32, #tpu.memory_space<smem>>
    %53 = vector.broadcast %52 : f32 to vector<2x128xf32>
    %54 = arith.mulf %23, %53 : vector<2x128xf32>
    %55 = arith.mulf %50, %54 : vector<2x128xf32>
    %c0_30 = arith.constant 0 : index
    %56 = arith.index_cast %c2_i32_26 : i32 to index
    %c0_31 = arith.constant 0 : index
    %c0_32 = arith.constant 0 : index
    %57 = vector.load %arg4[%c0_30, %56, %c0_31, %c0_32] : memref<1x4x2x128xf32, #tpu.memory_space<vmem>>, vector<1x1x2x128xf32>
    %58 = vector.shape_cast %57 : vector<1x1x2x128xf32> to vector<2x128xf32>
    %59 = vector.shape_cast %55 : vector<2x128xf32> to vector<1x1x2x128xf32>
    tpu.vector_store %arg4[%c0_30, %56, %c0_31, %c0_32], %59 {strides = array<i32>} : memref<1x4x2x128xf32, #tpu.memory_space<vmem>>, vector<1x1x2x128xf32>,
    %c3_i32_33 = arith.constant 3 : i32
    %c0_34 = arith.constant 0 : index
    %60 = arith.index_cast %c3_i32_33 : i32 to index
    %c0_35 = arith.constant 0 : index
    %c0_36 = arith.constant 0 : index
    %61 = vector.load %arg2[%c0_34, %60, %c0_35, %c0_36] : memref<1x4x2x128xf32, #tpu.memory_space<vmem>>, vector<1x1x2x128xf32>
    %62 = vector.shape_cast %61 : vector<1x1x2x128xf32> to vector<2x128xf32>
    %63 = arith.index_cast %c3_i32_33 : i32 to index
    %64 = memref.load %arg3[%63] : memref<4xf32, #tpu.memory_space<smem>>
    %65 = vector.broadcast %64 : f32 to vector<2x128xf32>
    %66 = arith.mulf %23, %65 : vector<2x128xf32>
    %67 = arith.mulf %62, %66 : vector<2x128xf32>
    %c0_37 = arith.constant 0 : index
    %68 = arith.index_cast %c3_i32_33 : i32 to index
    %c0_38 = arith.constant 0 : index
    %c0_39 = arith.constant 0 : index
    %69 = vector.load %arg4[%c0_37, %68, %c0_38, %c0_39] : memref<1x4x2x128xf32, #tpu.memory_space<vmem>>, vector<1x1x2x128xf32>
    %70 = vector.shape_cast %69 : vector<1x1x2x128xf32> to vector<2x128xf32>
    %71 = vector.shape_cast %67 : vector<2x128xf32> to vector<1x1x2x128xf32>
    tpu.vector_store %arg4[%c0_37, %68, %c0_38, %c0_39], %71 {strides = array<i32>} : memref<1x4x2x128xf32, #tpu.memory_space<vmem>>, vector<1x1x2x128xf32>,
    %c4_i32_40 = arith.constant 4 : i32
    return
  }
  func.func @transform_0(%arg0: i32, %arg1: i32) -> (i32, i32, i32, i32) {
    %c0_i32 = arith.constant 0 : i32
    %c0_i32_0 = arith.constant 0 : i32
    %c0_i32_1 = arith.constant 0 : i32
    return %arg0, %c0_i32, %arg1, %c0_i32_0 : i32, i32, i32, i32
  }
  func.func @transform_1(%arg0: i32, %arg1: i32) -> i32 {
    %c0_i32 = arith.constant 0 : i32
    %c0_i32_0 = arith.constant 0 : i32
    return %c0_i32 : i32
  }
  func.func @transform_2(%arg0: i32, %arg1: i32) -> (i32, i32, i32, i32) {
    %c0_i32 = arith.constant 0 : i32
    %c0_i32_0 = arith.constant 0 : i32
    %c0_i32_1 = arith.constant 0 : i32
    return %arg0, %c0_i32, %arg1, %c0_i32_0 : i32, i32, i32, i32
  }
}

</mosaic_0001>

<bundles_post_ra>
// kernel: tpu_custom_call.1
= control target key start
LH: loop header
LB: loop body
LE: loop exit
PB: predicated region body
PF: predicated region fallthrough
CT: control target
= control target key end

     0   :  { %7 = vsyncpa [#allocation3], 0  ;;  %s834_s0 = inlined_call_operand.hbm [shape: f32[2,4,2,128], index: 0, kind: input, shape index: {}]   ;;  %s835_s1 = inlined_call_operand.vmem [shape: f32[4], index: 1, kind: input, shape index: {}]   ;;  %s836_s2 = inlined_call_operand.hbm [shape: f32[2,4,2,128], index: 2, kind: output, shape index: {}]  }
   0x1   :  { %9 = vsyncpa [#allocation3 + $0x1], 0 }
   0x2   :  { %10 = vsyncpa [#allocation5], 0 }
   0x3   :  { %11 = vsyncpa [#allocation4], 0 }
   0x4   :  { %13 = vsyncpa [#allocation4 + $0x1], 0  ;;  %s613_s9 = smov 0   ;;  %s615_s10 = smov 0  }
   0x5   :  { %s617_s11 = smov 0   ;;  %s619_s12 = smov 0  }
   0x6   :  { %s621_s13 = smov 0   ;;  %s623_s14 = smov 0  }
   0x7 LB: > { %s348_s15 = sadd.s32 4294967295, %s589_s14   ;;  %s349_s16 = sadd.s32 4294967294, %s589_s14   ;;  %s589_s14 = sphi %s623_s14, %s19_s14   ;;  %s585_s13 = sphi %s621_s13, %s859_s13   ;;  %s581_s12 = sphi %s619_s12, %s858_s12   ;;  %s577_s11 = sphi %s617_s11, %s857_s11   ;;  %s573_s10 = sphi %s615_s10, %s856_s10   ;;  %s569_s9 = sphi %s613_s9, %s855_s9  }
   0x8   : > { %s40_s17 = sadd.s32 1, %s577_s11  ;;  %p47_p0 = scmp.ne.s32.totalorder %s577_s11, %s573_s10 }
   0x9   : > { %p48_p1 = scmp.eq.s32.totalorder %s589_s14, 0  ;;  %p53_p2 = scmp.ne.s32.totalorder %s573_s10, %s569_s9 }
   0xa   : > { %p651_p3 = scmp.eq.s32.totalorder %s348_s15, 0  ;;  %p100_p4 = scmp.eq.s32.totalorder %s348_s15, 1 }
   0xb   : > { %p655_p5 = por %p48_p1, %p47_p0  ;;  %p106_p6 = scmp.eq.s32.totalorder %s349_s16, 1 }
   0xc   : > { %s841_s18 = scalar_select %p651_p3, 1, 0 }
   0xd   : > { %p661_p7 = por %p651_p3, %p53_p2  ;;  %p665_p8 = por %p100_p4, %p47_p0 }
   0xe   : > { %p669_p9 = por %p106_p6, %p53_p2  ;;  %p350_p10 = scmp.ge.s32.totalorder %s589_s14, 1 }
   0xf   : > { %s843_s20 = scalar_select %p661_p7, 1, 0 }
  0x10   : > { %s844_s21 = scalar_select %p665_p8, 1, 0 }
  0x11   : > { %s845_s22 = scalar_select %p669_p9, 1, 0 }
  0x12   : > { %p113_p11 = scmp.lt.s32.totalorder %s589_s14, 3  ;;  %s126_s25 = sshll.u32 %s835_s1, 4  ;;  %s127_s25 = int_to_ptr.vmem [resolvable:$true] %s126_s25 }
  0x13   : > { %p400_p0 = scmp.lt.s32.totalorder %s589_s14, 2  ;;  %s31_s29 = sadd.s32 1, %s585_s13 }
  0x14   : > { %p678_p12 = pnand %p350_p10, %p113_p11  ;;  %p699_p6 = scmp.ge.s32.totalorder %s31_s29, 2 }
  0x15   : > { %p688_p2 = pnand %p400_p0, %p655_p5  ;;  %s137_s3 = sand.u32 1, %s577_s11  }
  0x16   : > { %p387_p1 = pneg %p678_p12  ;;  %s458_s4 = scalar_lea.vmem %s127_s25, 16 }
  0x17   : > { %p459_p10 = scmp.ne.s32.totalorder %s127_s25, %s458_s4  ;;  %p466_p13 = scmp.lt.s32.totalorder %s127_s25, %s127_s25 }
  0x18   : > { %p694_p4 = pnand %p387_p1, %p651_p3  ;;  %p467_p9 = scmp.lt.s32.totalorder %s458_s4, %s458_s4 }
  0x1a   : > { %p460_p11 = pneg %p694_p4  ;;  %p468_p8 = por %p467_p9, %p466_p13 }
  0x1c   : > { %p461_p5 = pnand %p460_p11, %p459_p10 }
  0x1e   : > { %p462_p0 = pneg %p461_p5 }
  0x20   : > { %p469_p1 = pnand %p468_p8, %p462_p0 }
  0x22   : > { %472 = shalt.err (!%p469_p1)
}
  0x23   : > { %s591_s5 = smov [#allocation6]   ;;  %s861_s29 = smov (%p699_p6, %s31_s29), 0 }
  0x24   : > { %390 = dma.vmem_to_smem (!%p694_p4), %s127_s25, 16, %s591_s5, [#allocation5]  }
  0x25   : > { %s353_s6 = sshll.u32 %s137_s3, 3  ;;  %s35_s7 = ssub.s32 %s585_s13, %s861_s29 }
  0x26   : > { %p38_p9 = scmp.eq.s32.totalorder %s35_s7, 0  ;;  %s377_s8 = sshll.u32 %s585_s13, 7 }
  0x27   : > { %s718_s19 = scalar_lea.hbm %s834_s0, %s377_s8  ;;  %s141_s23 = scalar_lea.vmem [#allocation2], %s353_s6 }
  0x28   : > { %s149_s24 = sshll.u32 %s141_s23, 4  ;;  %s727_s28 = scalar_lea.sflag [#allocation3], %s137_s3  ;;  %s725_s24 = int_to_ptr.vmem [resolvable:$true] %s149_s24 }
  0x29   : > { %s723_s25 = scalar_select %p38_p9, %s577_s11, %s40_s17  }
  0x2a   : > { %s473_s30 = scalar_lea.hbm %s718_s19, 128  ;;  %p475_p13 = pneg %p688_p2 }
  0x2b   : > { %p474_p8 = scmp.ne.s32.totalorder %s718_s19, %s473_s30  ;;  %s478_s6 = scalar_lea.hbm %s834_s0, 256 }
  0x2c   : > { %p479_p10 = scmp.lt.u32.totalorder %s718_s19, %s834_s0  ;;  %p480_p11 = scmp.lt.u32.totalorder %s478_s6, %s473_s30 }
  0x2d   : > { %p476_p4 = pnand %p475_p13, %p474_p8  ;;  %p482_p0 = scmp.lt.u32.totalorder %s473_s30, %s718_s19 }
  0x2e   : > { %p481_p5 = por %p480_p11, %p479_p10 }
  0x2f   : > { %p477_p6 = pneg %p476_p4 }
  0x30   : > { %p483_p1 = por %p482_p0, %p481_p5 }
  0x32   : > { %p484_p9 = pnand %p483_p1, %p477_p6 }
  0x34   : > { %487 = shalt.err (!%p484_p9)
}
  0x35   : > { %s488_s17 = scalar_lea.vmem %s725_s24, 128  ;;  %s592_s3 = smov [#allocation2]  }
  0x36   : > { %p489_p8 = scmp.ne.s32.totalorder %s725_s24, %s488_s17  ;;  %s493_s15 = sshll.u32 %s592_s3, 4  ;;  %s494_s15 = int_to_ptr.vmem [resolvable:$false] %s493_s15 }
  0x37   : > { %s495_s16 = scalar_lea.vmem %s494_s15, 256  ;;  %p496_p7 = scmp.lt.s32.totalorder %s725_s24, %s494_s15 }
  0x38   : > { %p491_p4 = pnand %p489_p8, %p475_p13  ;;  %p497_p10 = scmp.lt.s32.totalorder %s495_s16, %s488_s17 }
  0x3a   : > { %p492_p3 = pneg %p491_p4  ;;  %p498_p11 = por %p497_p10, %p496_p7 }
  0x3c   : > { %p499_p5 = pnand %p498_p11, %p492_p3 }
  0x3e   : > { %502 = shalt.err (!%p499_p5)
}
  0x3f   : > { %s593_s23 = smov 32   ;;  %s594_s30 = smov 2  }
  0x40   : > { %394 = dma.hbm_to_vmem [thread:$0]  (!%p688_p2), %s718_s19, 128, %s725_s24, %s727_s28, %s593_s23, %s593_s23, %s594_s30  }
  0x41   : > { %161 = sbr.rel (%p678_p12) target bundleno = 120 (0x78), region = 28  ;;  %s758_s4 = sand.u32 (!%p678_p12), 1, %s573_s10  }
  0x42   : > { %s357_s5 = sshll.u32 (!%p678_p12), %s758_s4, 3  ;;  %s164_s6 = scalar_lea.sflag (!%p678_p12), [#allocation3], %s758_s4 }
  0x43   : > { %s762_s7 = scalar_lea.vmem (!%p678_p12), [#allocation2], %s357_s5  ;;  %p850_p3 = scmp.ne.s32.totalorder (!%p678_p12), %s843_s20, 0 }
  0x48   : > { %556 = dma.done.wait (%p850_p3), %s164_s6, 128  }
  0x49   : > { %558 = vsyncadd (%p850_p3), %s164_s6, 4294967168  ;;  %p851_p7 = scmp.ne.s32.totalorder %s841_s18, 0 }
  0x4b   : > { %560 = dma.done.wait (%p851_p7), [#allocation5], 16  }
  0x4c   : > { %562 = vsyncadd (%p851_p7), [#allocation5], 4294967280 }
  0x4d   : > { %176 = sfence }
  0x4e   : > { %v193_v0 = vld [vmem:[%s762_s7] sm:$0x3]  ;;  %v360_v1 = vld [vmem:[%s762_s7 + $0x2] sm:$0x3]  ;;  %v361_v4 = vld [vmem:[%s762_s7 + $0x4] sm:$0x3] }
  0x4f   : > { %v194_v2 = vmul.f32 %v193_v0, %v193_v0  ;;  %v198_v3 = vmul.f32 %v360_v1, %v360_v1  ;;  %v362_v5 = vld [vmem:[%s762_s7 + $0x6] sm:$0x3]  ;;  %v202_v6 = vmul.f32 %v361_v4, %v361_v4  ;;  %s210_s18 = sld [smem:[#allocation6]]  ;;  %s364_s20 = sld [smem:[#allocation6 + $0x1]]  ;;  %v363_v17 = vld [vmem:[%s762_s7 + $0x2] sm:$0x3] }
  0x50   : > { %v206_v8 = vmul.f32 %v362_v5, %v362_v5  ;;  %s367_s26 = sld [smem:[#allocation6 + $0x2]]  ;;  %s370_s27 = sld [smem:[#allocation6 + $0x3]]  ;;  %v366_v18 = vld [vmem:[%s762_s7 + $0x4] sm:$0x3]  ;;  %v369_v19 = vld [vmem:[%s762_s7 + $0x6] sm:$0x3] }
  0x51   : > { %v199_v7 = vadd.f32 %v198_v3, %v194_v2  ;;  %s192_s19 = scalar_lea.vmem [#allocation7], %s357_s5  ;;  %s378_s28 = sshll.u32 %s581_s12, 7 }
  0x52   : > { %s251_s24 = sshll.u32 %s192_s19, 4  ;;  %s785_s3 = scalar_lea.hbm %s836_s2, %s378_s28  ;;  %s780_s24 = int_to_ptr.vmem [resolvable:$true] %s251_s24 }
  0x53   : > { %v203_v9 = vadd.f32 %v202_v6, %v199_v7  ;;  %s237_s12 = scalar_lea.sflag [#allocation4], %s758_s4  ;;  %s503_s15 = scalar_lea.vmem %s780_s24, 128 }
  0x54   : > { %p504_p12 = scmp.ne.s32.totalorder %s780_s24, %s503_s15  ;;  %p852_p2 = scmp.ne.s32.totalorder %s844_s21, 0 }
  0x55   : > { %v207_v10 = vadd.f32 %v206_v8, %v203_v9  ;;  %v211_v12 = vstv %s210_s18  ;;  %v217_v13 = vstv %s364_s20  ;;  %s595_s16 = smov [#allocation7]  }
  0x56   : > { %v224_v14 = vstv %s367_s26  ;;  %v231_v15 = vstv %s370_s27  ;;  %p505_p13 = pnand %p504_p12, %p852_p2  ;;  %s507_s23 = sshll.u32 %s595_s16, 4  ;;  %s508_s23 = int_to_ptr.vmem [resolvable:$false] %s507_s23 }
  0x57   : > { %v208_v11 = vmax.f32 %v207_v10, 1e-24  ;;  %s509_s30 = scalar_lea.vmem %s508_s23, 256  ;;  %p510_p0 = scmp.lt.s32.totalorder %s780_s24, %s508_s23 }
  0x58   : > { %p506_p6 = pneg %p505_p13  ;;  %p511_p1 = scmp.lt.s32.totalorder %s509_s30, %s503_s15 }
  0x59   : > { %456 = vrsqrt.f32 %v208_v11 }
  0x5a   : > { %p512_p9 = por %p511_p1, %p510_p0 }
  0x5c   : > { %p513_p8 = pnand %p512_p9, %p506_p6 }
  0x63   : > { %v457_v16 = vpop.eup %456 }
  0x64   : > { %v212_v20 = vmul.f32 %v457_v16, %v211_v12  ;;  %v218_v21 = vmul.f32 %v457_v16, %v217_v13  ;;  %v225_v22 = vmul.f32 %v457_v16, %v224_v14  ;;  %v232_v23 = vmul.f32 %v457_v16, %v231_v15 }
  0x66   : > { %v213_v24 = vmul.f32 %v212_v20, %v193_v0  ;;  %v219_v25 = vmul.f32 %v363_v17, %v218_v21  ;;  %v226_v26 = vmul.f32 %v366_v18, %v225_v22  ;;  %v233_v27 = vmul.f32 %v369_v19, %v232_v23 }
  0x68   : > { %214 = vst [vmem:[%s192_s19] sm:$0x3] %v213_v24  ;;  %365 = vst [vmem:[%s192_s19 + $0x2] sm:$0x3] %v219_v25 }
  0x69   : > { %368 = vst [vmem:[%s192_s19 + $0x4] sm:$0x3] %v226_v26  ;;  %371 = vst [vmem:[%s192_s19 + $0x6] sm:$0x3] %v233_v27 }
  0x6a   : > { %516 = shalt.err (!%p513_p8)
}
  0x6b   : > { %s517_s5 = scalar_lea.hbm %s785_s3, 128  ;;  %s521_s18 = scalar_lea.hbm %s836_s2, 256 }
  0x6c   : > { %p518_p4 = scmp.ne.s32.totalorder %s785_s3, %s517_s5  ;;  %p522_p5 = scmp.lt.u32.totalorder %s785_s3, %s836_s2 }
  0x6d   : > { %p523_p3 = scmp.lt.u32.totalorder %s521_s18, %s517_s5  ;;  %p525_p12 = scmp.lt.u32.totalorder %s517_s5, %s785_s3 }
  0x6e   : > { %p519_p10 = pnand %p518_p4, %p852_p2 }
  0x6f   : > { %p524_p7 = por %p523_p3, %p522_p5 }
  0x70   : > { %p520_p11 = pneg %p519_p10 }
  0x71   : > { %p526_p13 = por %p525_p12, %p524_p7 }
  0x73   : > { %p527_p6 = pnand %p526_p13, %p520_p11 }
  0x75   : > { %530 = shalt.err (!%p527_p6)
}
  0x76   : > { %s596_s27 = smov 32   ;;  %s597_s19 = smov 2  }
  0x77   : > { %385 = dma.vmem_to_hbm [thread:$0]  (%p852_p2), %s780_s24, 128, %s785_s3, %s237_s12, %s596_s27, %s596_s27, %s597_s19  }
  0x78 PF: > { %s266_s28 = sand.u32 1, %s569_s9   ;;  %p853_p0 = scmp.ne.s32.totalorder %s845_s22, 0 }
  0x79   : > { %p854_p1 = scmp.ge.s32.totalorder %s589_s14, 2  ;;  %s267_s8 = scalar_lea.sflag [#allocation4], %s266_s28 }
  0x7b   : > { %p396_p9 = pnand %p854_p1, %p853_p0 }
  0x7d   : > { %564 = dma.done.wait (!%p396_p9), %s267_s8, 128  }
  0x7e   : > { %566 = vsyncadd (!%p396_p9), %s267_s8, 4294967168  ;;  %s19_s14 = sadd.s32 1, %s589_s14   ;;  %s855_s9 = smov %s573_s10 }
  0x7f   : > { %p16_p8 = scmp.ge.s32.totalorder %s19_s14, 4   ;;  %s856_s10 = smov %s577_s11 }
  0x80   : > { %s857_s11 = smov %s723_s25  ;;  %s858_s12 = smov %s585_s13 }
  0x81   : > { %s859_s13 = smov %s861_s29  ;;  %18 = sbr.rel (!%p16_p8) target bundleno = 7 (0x7), region = 84 }
  0x88   :  { %272 = vsyncpa [#allocation3], 1 }
  0x89   :  { %274 = vsyncpa [#allocation3 + $0x1], 1 }
  0x8a   :  { %275 = vsyncpa [#allocation4], 1 }
  0x8b   :  { %277 = vsyncpa [#allocation4 + $0x1], 1 }
  0x8c   :  { %278 = vsyncpa [#allocation5], 1 }
  0x8d   :  { %280 = vsyncpa [#allocation5 + $0x1], 1 }

</bundles_post_ra>
